<compile_context>
chip_gen: v5e
topology: v5e:2x2
jax: 0.10.0
libtpu: 0.0.40
codegen_flags: <defaults>
</compile_context>

<pallas_src>
import functools

import jax
import jax.numpy as jnp
from jax.experimental import pallas as pl
from jax.experimental.pallas import tpu as pltpu

IN_DIM = 108
HID_DIM = 64
K_PAD = 128      # padded first-layer fan-in (sublane/lane aligned)
OUT_PAD = 128    # padded output lanes (lane-dense stores)


def _leaky_relu(x, negative_slope=0.01):
    return jnp.where(x >= 0, x, negative_slope * x)


def _round_up(x, m):
    return (x + m - 1) // m * m


def mlp_kernel(x_ref, w1_ref, b1_ref, w2_ref, b2_ref, w3_ref, b3_ref, o_ref):
    # One (TM, K_PAD) batch tile per grid step; weights are resident in VMEM.
    x = x_ref[...]

    h1 = jnp.dot(x, w1_ref[...], preferred_element_type=jnp.float32) + b1_ref[...]
    h1 = _leaky_relu(h1)

    h2 = jnp.dot(h1, w2_ref[...], preferred_element_type=jnp.float32) + b2_ref[...]
    h2 = _leaky_relu(h2)

    h3 = jnp.dot(h2, w3_ref[...], preferred_element_type=jnp.float32) + b3_ref[...]

    o_ref[...] = h3.astype(o_ref.dtype)


def model_forward(x, params):
    """x: (B, 108) float32. params: dict with w1,b1,w2,b2,w3,b3.

    Weights wN are stored as (in_features, out_features); biases bN as
    (1, out_features) -- i.e. y = x @ W + b (equivalent to PyTorch x @ W.T + b).
    """
    w1, b1 = params["w1"], params["b1"]
    w2, b2 = params["w2"], params["b2"]
    w3, b3 = params["w3"], params["b3"]

    B = x.shape[0]
    action_dim = w3.shape[1]

    # Batch tile: large (MXU-filling, multiple of 256) for big batches,
    # rounded-up-to-8 for tiny RL-style batches.
    TM = 512 if B >= 512 else max(8, _round_up(B, 8))
    B_pad = _round_up(B, TM)
    grid = (B_pad // TM,)

    # --- host-side padding (done once; folds under jit) ---------------------
    x_p = jnp.zeros((B_pad, K_PAD), jnp.float32).at[:B, :IN_DIM].set(x)
    w1_p = jnp.zeros((K_PAD, HID_DIM), jnp.float32).at[:IN_DIM, :].set(w1)
    w3_p = jnp.zeros((HID_DIM, OUT_PAD), jnp.float32).at[:, :action_dim].set(w3)
    b3_p = jnp.zeros((1, OUT_PAD), jnp.float32).at[:, :action_dim].set(b3)

    const = lambda i: (0, 0)  # weights/biases: same block every grid step

    out_padded = pl.pallas_call(
        mlp_kernel,
        out_shape=jax.ShapeDtypeStruct((B_pad, OUT_PAD), jnp.float32),
        grid=grid,
        in_specs=[
            pl.BlockSpec((TM, K_PAD), lambda i: (i, 0)),      # x tile
            pl.BlockSpec((K_PAD, HID_DIM), const),            # w1 (resident)
            pl.BlockSpec((1, HID_DIM), const),                # b1
            pl.BlockSpec((HID_DIM, HID_DIM), const),          # w2
            pl.BlockSpec((1, HID_DIM), const),                # b2
            pl.BlockSpec((HID_DIM, OUT_PAD), const),          # w3
            pl.BlockSpec((1, OUT_PAD), const),                # b3
        ],
        out_specs=pl.BlockSpec((TM, OUT_PAD), lambda i: (i, 0)),
        compiler_params=pltpu.CompilerParams(
            dimension_semantics=("parallel",),
        ),
    )(x_p, w1_p, b1, w2, b2, w3_p, b3_p)

    return out_padded[:B, :action_dim]


def init_params(key, action_dim):
    """Deterministic synthetic init matching PyTorch Linear shapes:
    fc_1: (64, 108), fc_2: (64, 64), fc_3: (action_dim, 64).
    Stored transposed as (in, out) for the kernel."""
    k1, k2, k3, k4, k5, k6 = jax.random.split(key, 6)

    def uniform_init(k, shape, fan_in):
        bound = 1.0 / jnp.sqrt(fan_in)
        return jax.random.uniform(k, shape, jnp.float32, -bound, bound)

    return {
        "w1": uniform_init(k1, (IN_DIM, HID_DIM), float(IN_DIM)),
        "b1": uniform_init(k2, (1, HID_DIM), float(IN_DIM)),
        "w2": uniform_init(k3, (HID_DIM, HID_DIM), float(HID_DIM)),
        "b2": uniform_init(k4, (1, HID_DIM), float(HID_DIM)),
        "w3": uniform_init(k5, (HID_DIM, action_dim), float(HID_DIM)),
        "b3": uniform_init(k6, (1, action_dim), float(HID_DIM)),
    }


def reference_forward(x, params):
    h1 = _leaky_relu(x @ params["w1"] + params["b1"])
    h2 = _leaky_relu(h1 @ params["w2"] + params["b2"])
    return h2 @ params["w3"] + params["b3"]


if __name__ == "__main__":
    key = jax.random.PRNGKey(0)
    kx, kp = jax.random.split(key)

    batch = 2
    action_dim = 8
    x = jax.random.normal(kx, (batch, IN_DIM), jnp.float32)
    params = init_params(kp, action_dim)

    fwd = jax.jit(model_forward)
    out = jax.block_until_ready(fwd(x, params))

    ref = reference_forward(x, params)
    assert out.shape == (batch, action_dim)
    assert jnp.allclose(out, ref, atol=1e-5, rtol=1e-5), "mismatch vs reference"

    # Exercise a larger, non-multiple-of-TM batch too (pipelined path).
    x_big = jax.random.normal(kx, (1000, IN_DIM), jnp.float32)
    out_big = jax.block_until_ready(fwd(x_big, params))
    ref_big = reference_forward(x_big, params)
    assert out_big.shape == (1000, action_dim)
    assert jnp.allclose(out_big, ref_big, atol=1e-4, rtol=1e-4), "mismatch (big batch)"

    print("KERNEL_OK")
</pallas_src>

<mosaic_0001>
module attributes {stable_mosaic.version = 11 : i64} {
  func.func @mlp_kernel(%arg0: i32, %arg1: memref<8x128xf32, #tpu.memory_space<vmem>>, %arg2: memref<128x64xf32, #tpu.memory_space<vmem>>, %arg3: memref<1x64xf32, #tpu.memory_space<vmem>>, %arg4: memref<64x64xf32, #tpu.memory_space<vmem>>, %arg5: memref<1x64xf32, #tpu.memory_space<vmem>>, %arg6: memref<64x128xf32, #tpu.memory_space<vmem>>, %arg7: memref<1x128xf32, #tpu.memory_space<vmem>>, %arg8: memref<8x128xf32, #tpu.memory_space<vmem>>) attributes {dimension_semantics = [#tpu.dimension_semantics<parallel>], iteration_bounds = array<i64: 1>, scalar_prefetch = 0 : i64, scratch_operands = 0 : i64, tpu.core_type = #tpu.core_type<tc>, window_params = [{transform_indices = @transform_0, window_bounds = array<i64: 8, 128>}, {pipeline_mode = #tpu.pipeline_mode<synchronous>, transform_indices = @transform_1, window_bounds = array<i64: 128, 64>}, {pipeline_mode = #tpu.pipeline_mode<synchronous>, transform_indices = @transform_2, window_bounds = array<i64: 1, 64>}, {pipeline_mode = #tpu.pipeline_mode<synchronous>, transform_indices = @transform_3, window_bounds = array<i64: 64, 64>}, {pipeline_mode = #tpu.pipeline_mode<synchronous>, transform_indices = @transform_4, window_bounds = array<i64: 1, 64>}, {pipeline_mode = #tpu.pipeline_mode<synchronous>, transform_indices = @transform_5, window_bounds = array<i64: 64, 128>}, {pipeline_mode = #tpu.pipeline_mode<synchronous>, transform_indices = @transform_6, window_bounds = array<i64: 1, 128>}, {transform_indices = @transform_7, window_bounds = array<i64: 8, 128>}]} {
    %c0 = arith.constant 0 : index
    %c0_0 = arith.constant 0 : index
    %0 = vector.load %arg1[%c0, %c0_0] : memref<8x128xf32, #tpu.memory_space<vmem>>, vector<8x128xf32>
    %c0_1 = arith.constant 0 : index
    %c0_2 = arith.constant 0 : index
    %1 = vector.load %arg2[%c0_1, %c0_2] : memref<128x64xf32, #tpu.memory_space<vmem>>, vector<128x64xf32>
    %cst = arith.constant dense<0.000000e+00> : vector<8x64xf32>
    %2 = tpu.matmul %0, %1, %cst {dimension_numbers = #tpu.dot_dimension_numbers<[1], [0], [0], [1], [0, 0, 1, 1], [], []>} : vector<8x128xf32>, vector<128x64xf32>, vector<8x64xf32> -> vector<8x64xf32>
    %c0_3 = arith.constant 0 : index
    %c0_4 = arith.constant 0 : index
    %3 = vector.load %arg3[%c0_3, %c0_4] : memref<1x64xf32, #tpu.memory_space<vmem>>, vector<1x64xf32>
    %4 = vector.broadcast %3 : vector<1x64xf32> to vector<8x64xf32>
    %5 = arith.addf %2, %4 : vector<8x64xf32>
    %cst_5 = arith.constant 0.000000e+00 : f32
    %6 = vector.broadcast %cst_5 : f32 to vector<8x64xf32>
    %7 = arith.cmpf oge, %5, %6 : vector<8x64xf32>
    %cst_6 = arith.constant 0.00999999977 : f32
    %8 = vector.broadcast %cst_6 : f32 to vector<8x64xf32>
    %9 = arith.mulf %8, %5 : vector<8x64xf32>
    %10 = arith.select %7, %5, %9 : vector<8x64xi1>, vector<8x64xf32>
    %c0_7 = arith.constant 0 : index
    %c0_8 = arith.constant 0 : index
    %11 = vector.load %arg4[%c0_7, %c0_8] : memref<64x64xf32, #tpu.memory_space<vmem>>, vector<64x64xf32>
    %cst_9 = arith.constant dense<0.000000e+00> : vector<8x64xf32>
    %12 = tpu.matmul %10, %11, %cst_9 {dimension_numbers = #tpu.dot_dimension_numbers<[1], [0], [0], [1], [0, 0, 1, 1], [], []>} : vector<8x64xf32>, vector<64x64xf32>, vector<8x64xf32> -> vector<8x64xf32>
    %c0_10 = arith.constant 0 : index
    %c0_11 = arith.constant 0 : index
    %13 = vector.load %arg5[%c0_10, %c0_11] : memref<1x64xf32, #tpu.memory_space<vmem>>, vector<1x64xf32>
    %14 = vector.broadcast %13 : vector<1x64xf32> to vector<8x64xf32>
    %15 = arith.addf %12, %14 : vector<8x64xf32>
    %cst_12 = arith.constant 0.000000e+00 : f32
    %16 = vector.broadcast %cst_12 : f32 to vector<8x64xf32>
    %17 = arith.cmpf oge, %15, %16 : vector<8x64xf32>
    %cst_13 = arith.constant 0.00999999977 : f32
    %18 = vector.broadcast %cst_13 : f32 to vector<8x64xf32>
    %19 = arith.mulf %18, %15 : vector<8x64xf32>
    %20 = arith.select %17, %15, %19 : vector<8x64xi1>, vector<8x64xf32>
    %c0_14 = arith.constant 0 : index
    %c0_15 = arith.constant 0 : index
    %21 = vector.load %arg6[%c0_14, %c0_15] : memref<64x128xf32, #tpu.memory_space<vmem>>, vector<64x128xf32>
    %cst_16 = arith.constant dense<0.000000e+00> : vector<8x128xf32>
    %22 = tpu.matmul %20, %21, %cst_16 {dimension_numbers = #tpu.dot_dimension_numbers<[1], [0], [0], [1], [0, 0, 1, 1], [], []>} : vector<8x64xf32>, vector<64x128xf32>, vector<8x128xf32> -> vector<8x128xf32>
    %c0_17 = arith.constant 0 : index
    %c0_18 = arith.constant 0 : index
    %23 = vector.load %arg7[%c0_17, %c0_18] : memref<1x128xf32, #tpu.memory_space<vmem>>, vector<1x128xf32>
    %24 = vector.broadcast %23 : vector<1x128xf32> to vector<8x128xf32>
    %25 = arith.addf %22, %24 : vector<8x128xf32>
    %c0_19 = arith.constant 0 : index
    %c0_20 = arith.constant 0 : index
    %26 = vector.load %arg8[%c0_19, %c0_20] : memref<8x128xf32, #tpu.memory_space<vmem>>, vector<8x128xf32>
    tpu.vector_store %arg8[%c0_19, %c0_20], %25 {strides = array<i32>} : memref<8x128xf32, #tpu.memory_space<vmem>>, vector<8x128xf32>,
    return
  }
  func.func @transform_0(%arg0: i32) -> (i32, i32) {
    %c0_i32 = arith.constant 0 : i32
    %c0_i32_0 = arith.constant 0 : i32
    return %arg0, %c0_i32 : i32, i32
  }
  func.func @transform_1(%arg0: i32) -> (i32, i32) {
    %c0_i32 = arith.constant 0 : i32
    %c0_i32_0 = arith.constant 0 : i32
    %c0_i32_1 = arith.constant 0 : i32
    return %c0_i32, %c0_i32_0 : i32, i32
  }
  func.func @transform_2(%arg0: i32) -> (i32, i32) {
    %c0_i32 = arith.constant 0 : i32
    %c0_i32_0 = arith.constant 0 : i32
    %c0_i32_1 = arith.constant 0 : i32
    return %c0_i32, %c0_i32_0 : i32, i32
  }
  func.func @transform_3(%arg0: i32) -> (i32, i32) {
    %c0_i32 = arith.constant 0 : i32
    %c0_i32_0 = arith.constant 0 : i32
    %c0_i32_1 = arith.constant 0 : i32
    return %c0_i32, %c0_i32_0 : i32, i32
  }
  func.func @transform_4(%arg0: i32) -> (i32, i32) {
    %c0_i32 = arith.constant 0 : i32
    %c0_i32_0 = arith.constant 0 : i32
    %c0_i32_1 = arith.constant 0 : i32
    return %c0_i32, %c0_i32_0 : i32, i32
  }
  func.func @transform_5(%arg0: i32) -> (i32, i32) {
    %c0_i32 = arith.constant 0 : i32
    %c0_i32_0 = arith.constant 0 : i32
    %c0_i32_1 = arith.constant 0 : i32
    return %c0_i32, %c0_i32_0 : i32, i32
  }
  func.func @transform_6(%arg0: i32) -> (i32, i32) {
    %c0_i32 = arith.constant 0 : i32
    %c0_i32_0 = arith.constant 0 : i32
    %c0_i32_1 = arith.constant 0 : i32
    return %c0_i32, %c0_i32_0 : i32, i32
  }
  func.func @transform_7(%arg0: i32) -> (i32, i32) {
    %c0_i32 = arith.constant 0 : i32
    %c0_i32_0 = arith.constant 0 : i32
    return %arg0, %c0_i32 : i32, i32
  }
}

</mosaic_0001>

<bundles_post_ra>
// kernel: model_forward.1
= control target key start
LH: loop header
LB: loop body
LE: loop exit
PB: predicated region body
PF: predicated region fallthrough
CT: control target
= control target key end

     0   :  { %vm82_vm1 = vcmask 523264   ;;  %s307_s1 = inlined_call_operand.vmem [shape: f32[128,64], index: 1, kind: input, shape index: {}]   ;;  %s308_s3 = inlined_call_operand.vmem [shape: f32[64,64], index: 3, kind: input, shape index: {}]   ;;  %s309_s2 = inlined_call_operand.vmem [shape: f32[1,64], index: 2, kind: input, shape index: {}]   ;;  %s310_s0 = inlined_call_operand.vmem [shape: f32[8,128], index: 0, kind: input, shape index: {}]   ;;  %s311_s4 = inlined_call_operand.vmem [shape: f32[1,64], index: 4, kind: input, shape index: {}]   ;;  %s312_s5 = inlined_call_operand.vmem [shape: f32[64,128], index: 5, kind: input, shape index: {}]   ;;  %s313_s6 = inlined_call_operand.vmem [shape: f32[1,128], index: 6, kind: input, shape index: {}]   ;;  %s314_s7 = inlined_call_operand.vmem [shape: f32[8,128], index: 7, kind: output, shape index: {}]  }
   0x1   :  { %v42_v0 = vld [vmem:[%s307_s1 + $0x78] sm:$0xff]  ;;  %v41_v1 = vld [vmem:[%s307_s1 + $0x70] sm:$0xff]  ;;  %v40_v2 = vld [vmem:[%s307_s1 + $0x68] sm:$0xff] }
   0x2   :  { %47 = vmatpush.msra.mxu0 %v42_v0  ;;  %v39_v3 = vld [vmem:[%s307_s1 + $0x60] sm:$0xff]  ;;  %v77_v4 = vld [vmem:[%s308_s3 + $0x38] sm:$0xff]  ;;  %v76_v6 = vld [vmem:[%s308_s3 + $0x30] sm:$0xff] }
   0x3   :  { %v38_v5 = vld [vmem:[%s307_s1 + $0x58] sm:$0xff]  ;;  %94 = vmatpush.msra.mxu1 %v77_v4  ;;  %v75_v7 = vld [vmem:[%s308_s3 + $0x28] sm:$0xff]  ;;  %v37_v8 = vld [vmem:[%s307_s1 + $0x50] sm:$0xff] }
   0x4   :  { %48 = vmatpush.msra.mxu0 %v41_v1  ;;  %v74_v9 = vld [vmem:[%s308_s3 + $0x20] sm:$0xff]  ;;  %v36_v10 = vld [vmem:[%s307_s1 + $0x48] sm:$0xff]  ;;  %v73_v11 = vld [vmem:[%s308_s3 + $0x18] sm:$0xff] }
   0x5   :  { %95 = vmatpush.msra.mxu1 %v76_v6  ;;  %v35_v12 = vld [vmem:[%s307_s1 + $0x40] sm:$0xff]  ;;  %v34_v13 = vld [vmem:[%s307_s1 + $0x38] sm:$0xff]  ;;  %v33_v14 = vld [vmem:[%s307_s1 + $0x30] sm:$0xff] }
   0x6   :  { %49 = vmatpush.msra.mxu0 %v40_v2  ;;  %v32_v15 = vld [vmem:[%s307_s1 + $0x28] sm:$0xff]  ;;  %v31_v16 = vld [vmem:[%s307_s1 + $0x20] sm:$0xff]  ;;  %v30_v17 = vld [vmem:[%s307_s1 + $0x18] sm:$0xff] }
   0x7   :  { %96 = vmatpush.msra.mxu1 %v75_v7  ;;  %v29_v18 = vld [vmem:[%s307_s1 + $0x10] sm:$0xff]  ;;  %v28_v19 = vld [vmem:[%s307_s1 + $0x8] sm:$0xff]  ;;  %v27_v20 = vld [vmem:[%s307_s1] sm:$0xff] }
   0x8   :  { %50 = vmatpush.msra.mxu0 %v39_v3  ;;  %v26_v21 = vld [vmem:[%s310_s0] sm:$0xff]  ;;  %v72_v22 = vld [vmem:[%s308_s3 + $0x10] sm:$0xff]  ;;  %v71_v23 = vld [vmem:[%s308_s3 + $0x8] sm:$0xff] }
   0x9   :  { %97 = vmatpush.msra.mxu1 %v74_v9  ;;  %v70_v24 = vld [vmem:[%s308_s3] sm:$0xff]  ;;  %v116_v25 = vld [vmem:[%s312_s5 + $0x38] sm:$0xff]  ;;  %v115_v26 = vld [vmem:[%s312_s5 + $0x30] sm:$0xff] }
   0xa   :  { %51 = vmatpush.msra.mxu0 %v38_v5  ;;  %132 = vmatpush.msra.mxu2 %v116_v25  ;;  %v114_v27 = vld [vmem:[%s312_s5 + $0x28] sm:$0xff]  ;;  %v113_v28 = vld [vmem:[%s312_s5 + $0x20] sm:$0xff]  ;;  %v112_v29 = vld [vmem:[%s312_s5 + $0x18] sm:$0xff] }
   0xb   :  { %98 = vmatpush.msra.mxu1 %v73_v11  ;;  %v151_v30 = vld [vmem:[%s309_s2] ss:$0 sm:$0xff]  ;;  %v111_v35 = vld [vmem:[%s312_s5 + $0x10] sm:$0xff]  ;;  %v110_v36 = vld [vmem:[%s312_s5 + $0x8] sm:$0xff] }
   0xc   :  { %52 = vmatpush.msra.mxu0 %v37_v8  ;;  %133 = vmatpush.msra.mxu2 %v115_v26  ;;  %v109_v37 = vld [vmem:[%s312_s5] sm:$0xff] }
   0xd   :  { %99 = vmatpush.msra.mxu1 %v72_v22  ;;  %v152_v38 = vld [vmem:[%s311_s4] ss:$0 sm:$0xff] }
   0xe   :  { %53 = vmatpush.msra.mxu0 %v36_v10  ;;  %134 = vmatpush.msra.mxu2 %v114_v27  ;;  %v153_v43 = vld [vmem:[%s313_s6] ss:$0 sm:$0xff] }
   0xf   :  { %100 = vmatpush.msra.mxu1 %v71_v23 }
  0x10   :  { %54 = vmatpush.msra.mxu0 %v35_v12  ;;  %135 = vmatpush.msra.mxu2 %v113_v28 }
  0x11   :  { %101 = vmatpush.msra.mxu1 %v70_v24 }
  0x12   :  { %55 = vmatpush.msra.mxu0 %v34_v13  ;;  %136 = vmatpush.msra.mxu2 %v112_v29 }
  0x14   :  { %56 = vmatpush.msra.mxu0 %v33_v14  ;;  %137 = vmatpush.msra.mxu2 %v111_v35 }
  0x16   :  { %57 = vmatpush.msra.mxu0 %v32_v15  ;;  %138 = vmatpush.msra.mxu2 %v110_v36 }
  0x18   :  { %58 = vmatpush.msra.mxu0 %v31_v16  ;;  %139 = vmatpush.msra.mxu2 %v109_v37 }
  0x1a   :  { %59 = vmatpush.msra.mxu0 %v30_v17 }
  0x1c   :  { %60 = vmatpush.msra.mxu0 %v29_v18 }
  0x1e   :  { %61 = vmatpush.msra.mxu0 %v28_v19 }
  0x20   :  { %62 = vmatpush.msra.mxu0 %v27_v20 }
  0x21   :  { %63 = vmatmul.f32.vlgmr.msra.gmra.mxu0 %v26_v21 }
  0x9e   :  { %v64_v31 = vpop.f32.mrf.mxu0 }
  0x9f   :  { %v65_v32 = vadd.f32 %v151_v30, %v64_v31 }
  0xa1   :  { %v68_v33 = vmul.f32 0.01, %v65_v32  ;;  %vm67_vm0 = vcmp.ge.f32.partialorder %v65_v32, 0.0 }
  0xa3   :  { %v69_v34 = vsel %vm67_vm0, %v65_v32, %v68_v33 }
  0xa4   :  { %149 = vmatmul.msk.f32.vlgmr.msra.gmra.mxu1 %vm82_vm1, %v69_v34 }
 0x121   :  { %v103_v39 = vpop.f32.mrf.mxu1 }
 0x122   :  { %v104_v40 = vadd.f32 %v152_v38, %v103_v39 }
 0x124   :  { %v107_v41 = vmul.f32 0.01, %v104_v40  ;;  %vm106_vm2 = vcmp.ge.f32.partialorder %v104_v40, 0.0 }
 0x126   :  { %v108_v42 = vsel %vm106_vm2, %v104_v40, %v107_v41 }
 0x127   :  { %150 = vmatmul.msk.f32.vlgmr.msra.gmra.mxu2 %vm82_vm1, %v108_v42 }
 0x1aa   :  { %v141_v44 = vpop.f32.mrf.mxu2 }
 0x1ab   :  { %v142_v45 = vadd.f32 %v153_v43, %v141_v44 }
 0x1ad   :  { %144 = vst [vmem:[%s314_s7] sm:$0xff] %v142_v45 }

</bundles_post_ra>
